<compile_context>
chip_gen: v7x
topology: tpu7x:2x2x1
jax: 0.10.0
libtpu: 0.0.40
codegen_flags: <defaults>
</compile_context>

<pallas_src>
import jax
import jax.numpy as jnp
from jax.experimental import pallas as pl
from jax.experimental.pallas import tpu as pltpu


def attn_decoder_kernel(hidden_ref, mask_ref,
                        w1t_ref, b1_ref, w2_ref,
                        wlt_ref, bl_ref,
                        attn_ref, pred_ref):
    bB, T, H = hidden_ref.shape
    H2 = w1t_ref.shape[1]

    hidden = hidden_ref[...]                         # [bB, T, H] f32
    hidden_bf = hidden.astype(jnp.bfloat16)          # MXU-feeding copy

    # --- TanhAttention layer 1 as a flat 2-D bf16 matmul (MXU), f32 accumulate ---
    h2d = hidden_bf.reshape(bB * T, H)               # [bB*T, H]
    a1 = jnp.tanh(
        jnp.dot(h2d, w1t_ref[...], preferred_element_type=jnp.float32)
        + b1_ref[...])                               # [bB*T, H2]  (+[1,H2] broadcast)

    # --- layer-2 scores: [bB, T, H2] . [H2] -> [bB, T] ---------------------------
    a1_3d = a1.reshape(bB, T, H2)
    scores = jnp.einsum('bto,o->bt', a1_3d, w2_ref[0, :],
                        preferred_element_type=jnp.float32)     # [bB, T]

    # --- masked softmax over the sequence axis (kept in f32) ---------------------
    mask = mask_ref[...]                             # [bB, T]
    scores = jnp.where(mask > 0.5, jnp.float32(-1e30), scores)
    m = jnp.max(scores, axis=-1, keepdims=True)
    e = jnp.exp(scores - m)
    denom = jnp.sum(e, axis=-1, keepdims=True)
    # NOTE: fully-padded rows give denom==0 -> inf/NaN, same as the PyTorch ref.
    attn = e * pl.reciprocal(denom, approx=True)     # EUP vrcp slot
    attn_ref[...] = attn

    # --- context = attn @ hidden as a batched MXU contraction --------------------
    attn3 = attn.astype(jnp.bfloat16).reshape(bB, 1, T)
    ctx = jnp.einsum('bqt,bth->bqh', attn3, hidden_bf,
                     preferred_element_type=jnp.float32)        # [bB, 1, H]
    context = ctx.reshape(bB, H)

    # dropout (eval) == identity; ReLU; output linear (lane-padded O) + sigmoid
    context = jnp.maximum(context, jnp.float32(0.0)).astype(jnp.bfloat16)
    logits = (jnp.dot(context, wlt_ref[...], preferred_element_type=jnp.float32)
              + bl_ref[...])                                    # [bB, O_pad]
    pred_ref[...] = jax.nn.sigmoid(logits)


def _pick_block_b(B, T, H, budget_bytes=8 << 20):
    """Largest batch tile (divisor of B) whose working set fits a modest VMEM budget."""
    per_row = 4 * (T * H * 4)            # hidden f32 + bf16 copy + a1 + headroom
    bB = max(1, min(B, budget_bytes // per_row))
    if bB < B:
        bB = max(8, (bB // 8) * 8)       # keep second-minor dim sublane-aligned
    while B % bB:
        bB -= 1
    return max(1, bB)


def attn_decoder(hidden, mask, w1, b1, w2, wl, bl):
    B, T, H = hidden.shape
    H2 = w1.shape[0]
    O = wl.shape[0]
    O_pad = ((O + 127) // 128) * 128                 # lane-dense prediction slab

    # One-time wrapper-side layout plumbing: transpose to [in, out], pad O to 128
    # lanes, and cast the MXU-fed weights to bf16 (f32 accumulation in-kernel).
    w1_t = jnp.asarray(w1, jnp.float32).T.astype(jnp.bfloat16)            # [H, H2]
    b1_r = jnp.asarray(b1, jnp.float32).reshape(1, H2)                    # [1, H2]
    w2_r = jnp.asarray(w2, jnp.float32).reshape(1, H2)                    # [1, H2]
    wl_t = jnp.zeros((H, O_pad), jnp.float32).at[:, :O].set(
        jnp.asarray(wl, jnp.float32).T).astype(jnp.bfloat16)              # [H, O_pad]
    bl_p = jnp.zeros((1, O_pad), jnp.float32).at[:, :O].set(
        jnp.asarray(bl, jnp.float32).reshape(1, O))                       # [1, O_pad]

    bB = _pick_block_b(B, T, H)
    nb = B // bB

    # Rough VMEM request: double-buffered per-step tiles + resident weights + slack.
    tile_bytes = bB * T * H * 4 + 2 * bB * T * 4 + bB * O_pad * 4
    weight_bytes = (H * H2 + H * O_pad) * 2 + (2 * H2 + O_pad) * 4
    vmem_limit = int(min(48 << 20, max(16 << 20, 4 * tile_bytes + weight_bytes + (4 << 20))))

    cost = pl.CostEstimate(
        flops=2 * B * T * H * H2 + 2 * B * T * H2 + 2 * B * T * H + 2 * B * H * O_pad,
        transcendentals=B * T * H2 + B * T + B * O_pad,
        bytes_accessed=4 * (B * T * H + 2 * B * T + B * O_pad)
        + 2 * (H * H2 + H * O_pad) + 4 * (2 * H2 + O_pad),
    )

    attn, pred_pad = pl.pallas_call(
        attn_decoder_kernel,
        grid=(nb,),
        in_specs=[
            pl.BlockSpec((bB, T, H), lambda i: (i, 0, 0)),     # hidden (batch-tiled)
            pl.BlockSpec((bB, T), lambda i: (i, 0)),           # mask   (batch-tiled)
            pl.BlockSpec((H, H2), lambda i: (0, 0)),           # W1^T   (resident)
            pl.BlockSpec((1, H2), lambda i: (0, 0)),           # b1     (resident)
            pl.BlockSpec((1, H2), lambda i: (0, 0)),           # w2     (resident)
            pl.BlockSpec((H, O_pad), lambda i: (0, 0)),        # Wl^T   (padded, resident)
            pl.BlockSpec((1, O_pad), lambda i: (0, 0)),        # bl     (padded, resident)
        ],
        out_specs=(
            pl.BlockSpec((bB, T), lambda i: (i, 0)),           # attention weights
            pl.BlockSpec((bB, O_pad), lambda i: (i, 0)),       # lane-dense pred slab
        ),
        out_shape=(jax.ShapeDtypeStruct((B, T), jnp.float32),
                   jax.ShapeDtypeStruct((B, O_pad), jnp.float32)),
        compiler_params=pltpu.CompilerParams(
            dimension_semantics=("parallel",),   # batch tiles shard across TCs on v7x
            vmem_limit_bytes=vmem_limit,
        ),
        cost_estimate=cost,
    )(hidden, mask, w1_t, b1_r, w2_r, wl_t, bl_p)

    return attn, pred_pad[:, :O]


def reference(hidden, mask, w1, b1, w2, wl, bl):
    """Pure-JAX f32 reference mirroring the PyTorch forward (eval mode)."""
    a1 = jnp.tanh(jnp.einsum('bth,oh->bto', hidden, w1) + b1[0])
    scores = jnp.einsum('bto,o->bt', a1, w2[0])
    scores = jnp.where(mask > 0.5, -1e30, scores)
    attn = jax.nn.softmax(scores, axis=-1)
    context = jnp.sum(attn[:, :, None] * hidden, axis=1)
    context = jax.nn.relu(context)
    pred = jax.nn.sigmoid(jnp.einsum('bh,oh->bo', context, wl) + bl[0])
    return attn, pred


if __name__ == "__main__":
    # Small shapes consistent with the module: batch=2, seq=8, hidden=32, output_size=1
    B, T, H, O = 2, 8, 32, 1
    H2 = H // 2  # TanhAttention intermediate size

    key = jax.random.PRNGKey(0)
    k_hid, k_w1, k_b1, k_w2, k_wl, k_bl = jax.random.split(key, 6)

    hidden = jax.random.normal(k_hid, (B, T, H), dtype=jnp.float32)

    # mask: 1.0 marks padded positions (second sequence has length 5)
    lengths = jnp.array([T, 5], dtype=jnp.int32)
    pos = jnp.arange(T, dtype=jnp.int32)[None, :]
    mask = (pos >= lengths[:, None]).astype(jnp.float32)        # [B, T]

    # Deterministic parameter init (PyTorch Linear convention: [out, in])
    w1 = jax.random.normal(k_w1, (H2, H), dtype=jnp.float32) * 0.1
    b1 = jax.random.normal(k_b1, (1, H2), dtype=jnp.float32) * 0.1
    w2 = jax.random.normal(k_w2, (1, H2), dtype=jnp.float32) * 0.1
    wl = jax.random.normal(k_wl, (O, H), dtype=jnp.float32) * 0.1
    bl = jax.random.normal(k_bl, (1, O), dtype=jnp.float32) * 0.1

    attn, pred = attn_decoder(hidden, mask, w1, b1, w2, wl, bl)
    jax.block_until_ready((attn, pred))

    attn_ref, pred_ref = reference(hidden, mask, w1, b1, w2, wl, bl)
    # bf16 MXU inputs (f32 accumulate) => relaxed tolerance vs. the f32 reference.
    assert jnp.allclose(attn, attn_ref, atol=2e-2, rtol=2e-2), "attn mismatch"
    assert jnp.allclose(pred, pred_ref, atol=2e-2, rtol=2e-2), "predict mismatch"
    # attention over padded positions must be exactly (numerically) zero
    assert float(jnp.max(jnp.abs(attn * mask))) < 1e-6
    assert attn.shape == (B, T) and pred.shape == (B, O)

    print("KERNEL_OK")
</pallas_src>

<mosaic_0001>
module attributes {stable_mosaic.version = 11 : i64} {
  func.func @attn_decoder_kernel(%arg0: i32, %arg1: memref<2x8x32xf32, #tpu.memory_space<vmem>>, %arg2: memref<2x8xf32, #tpu.memory_space<vmem>>, %arg3: memref<32x16xbf16, #tpu.memory_space<vmem>>, %arg4: memref<1x16xf32, #tpu.memory_space<vmem>>, %arg5: memref<1x16xf32, #tpu.memory_space<vmem>>, %arg6: memref<32x128xbf16, #tpu.memory_space<vmem>>, %arg7: memref<1x128xf32, #tpu.memory_space<vmem>>, %arg8: memref<2x8xf32, #tpu.memory_space<vmem>>, %arg9: memref<2x128xf32, #tpu.memory_space<vmem>>) attributes {dimension_semantics = [#tpu.dimension_semantics<parallel>], iteration_bounds = array<i64: 1>, scalar_prefetch = 0 : i64, scratch_operands = 0 : i64, tpu.core_type = #tpu.core_type<tc>, window_params = [{transform_indices = @transform_0, window_bounds = array<i64: 2, 8, 32>}, {transform_indices = @transform_1, window_bounds = array<i64: 2, 8>}, {pipeline_mode = #tpu.pipeline_mode<synchronous>, transform_indices = @transform_2, window_bounds = array<i64: 32, 16>}, {pipeline_mode = #tpu.pipeline_mode<synchronous>, transform_indices = @transform_3, window_bounds = array<i64: 1, 16>}, {pipeline_mode = #tpu.pipeline_mode<synchronous>, transform_indices = @transform_4, window_bounds = array<i64: 1, 16>}, {pipeline_mode = #tpu.pipeline_mode<synchronous>, transform_indices = @transform_5, window_bounds = array<i64: 32, 128>}, {pipeline_mode = #tpu.pipeline_mode<synchronous>, transform_indices = @transform_6, window_bounds = array<i64: 1, 128>}, {transform_indices = @transform_7, window_bounds = array<i64: 2, 8>}, {transform_indices = @transform_8, window_bounds = array<i64: 2, 128>}]} {
    %c0 = arith.constant 0 : index
    %c0_0 = arith.constant 0 : index
    %c0_1 = arith.constant 0 : index
    %0 = vector.load %arg1[%c0, %c0_0, %c0_1] : memref<2x8x32xf32, #tpu.memory_space<vmem>>, vector<2x8x32xf32>
    %1 = arith.truncf %0 : vector<2x8x32xf32> to vector<2x8x32xbf16>
    %2 = vector.shape_cast %1 : vector<2x8x32xbf16> to vector<16x32xbf16>
    %c0_2 = arith.constant 0 : index
    %c0_3 = arith.constant 0 : index
    %3 = vector.load %arg3[%c0_2, %c0_3] : memref<32x16xbf16, #tpu.memory_space<vmem>>, vector<32x16xbf16>
    %cst = arith.constant dense<0.000000e+00> : vector<16x16xf32>
    %4 = tpu.matmul %2, %3, %cst {dimension_numbers = #tpu.dot_dimension_numbers<[1], [0], [0], [1], [0, 0, 1, 1], [], []>} : vector<16x32xbf16>, vector<32x16xbf16>, vector<16x16xf32> -> vector<16x16xf32>
    %c0_4 = arith.constant 0 : index
    %c0_5 = arith.constant 0 : index
    %5 = vector.load %arg4[%c0_4, %c0_5] : memref<1x16xf32, #tpu.memory_space<vmem>>, vector<1x16xf32>
    %6 = vector.broadcast %5 : vector<1x16xf32> to vector<16x16xf32>
    %7 = arith.addf %4, %6 : vector<16x16xf32>
    %8 = math.tanh %7 : vector<16x16xf32>
    %9 = vector.shape_cast %8 : vector<16x16xf32> to vector<2x8x16xf32>
    %c0_6 = arith.constant 0 : index
    %c0_7 = arith.constant 0 : index
    %10 = vector.load %arg5[%c0_6, %c0_7] : memref<1x16xf32, #tpu.memory_space<vmem>>, vector<1x16xf32>
    %11 = vector.shape_cast %10 : vector<1x16xf32> to vector<16xf32>
    "tpu.trace_start"() <{level = 10 : i32, message = "bto,o->bt"}> : () -> ()
    %cst_8 = arith.constant dense<0.000000e+00> : vector<2x8xf32>
    %12 = tpu.matmul %9, %11, %cst_8 {dimension_numbers = #tpu.dot_dimension_numbers<[2], [0], [0, 1], [], [0, 0, 0, 1], [], []>} : vector<2x8x16xf32>, vector<16xf32>, vector<2x8xf32> -> vector<2x8xf32>
    "tpu.trace_stop"() : () -> ()
    %c0_9 = arith.constant 0 : index
    %c0_10 = arith.constant 0 : index
    %13 = vector.load %arg2[%c0_9, %c0_10] : memref<2x8xf32, #tpu.memory_space<vmem>>, vector<2x8xf32>
    %cst_11 = arith.constant 5.000000e-01 : f32
    %14 = vector.broadcast %cst_11 : f32 to vector<2x8xf32>
    %15 = arith.cmpf ogt, %13, %14 : vector<2x8xf32>
    %cst_12 = arith.constant -1.000000e+30 : f32
    %16 = vector.broadcast %cst_12 : f32 to vector<2x8xf32>
    %17 = arith.select %15, %16, %12 : vector<2x8xi1>, vector<2x8xf32>
    %cst_13 = arith.constant dense<0xFF800000> : vector<2xf32>
    %18 = vector.multi_reduction <maximumf>, %17, %cst_13 [1] : vector<2x8xf32> to vector<2xf32>
    %19 = vector.shape_cast %18 : vector<2xf32> to vector<2x1xf32>
    %20 = vector.broadcast %19 : vector<2x1xf32> to vector<2x8xf32>
    %21 = arith.subf %17, %20 : vector<2x8xf32>
    %22 = math.exp %21 : vector<2x8xf32>
    %cst_14 = arith.constant dense<0.000000e+00> : vector<2xf32>
    %23 = vector.multi_reduction <add>, %22, %cst_14 [1] : vector<2x8xf32> to vector<2xf32>
    %24 = vector.shape_cast %23 : vector<2xf32> to vector<2x1xf32>
    %25 = tpu.reciprocal %24 {approx = true} : vector<2x1xf32> -> vector<2x1xf32>
    %26 = vector.broadcast %25 : vector<2x1xf32> to vector<2x8xf32>
    %27 = arith.mulf %22, %26 : vector<2x8xf32>
    %c0_15 = arith.constant 0 : index
    %c0_16 = arith.constant 0 : index
    %28 = vector.load %arg8[%c0_15, %c0_16] : memref<2x8xf32, #tpu.memory_space<vmem>>, vector<2x8xf32>
    tpu.vector_store %arg8[%c0_15, %c0_16], %27 {strides = array<i32>} : memref<2x8xf32, #tpu.memory_space<vmem>>, vector<2x8xf32>,
    %29 = arith.truncf %27 : vector<2x8xf32> to vector<2x8xbf16>
    %30 = vector.shape_cast %29 : vector<2x8xbf16> to vector<2x1x8xbf16>
    "tpu.trace_start"() <{level = 10 : i32, message = "bqt,bth->bqh"}> : () -> ()
    %cst_17 = arith.constant dense<0.000000e+00> : vector<2x1x32xf32>
    %31 = tpu.matmul %30, %1, %cst_17 {dimension_numbers = #tpu.dot_dimension_numbers<[2], [1], [1], [2], [0, 0, 0, 1, 1, 2], [0], [0]>} : vector<2x1x8xbf16>, vector<2x8x32xbf16>, vector<2x1x32xf32> -> vector<2x1x32xf32>
    "tpu.trace_stop"() : () -> ()
    %32 = vector.shape_cast %31 : vector<2x1x32xf32> to vector<2x32xf32>
    %cst_18 = arith.constant 0.000000e+00 : f32
    %33 = vector.broadcast %cst_18 : f32 to vector<2x32xf32>
    %34 = arith.maximumf %32, %33 : vector<2x32xf32>
    %35 = arith.truncf %34 : vector<2x32xf32> to vector<2x32xbf16>
    %c0_19 = arith.constant 0 : index
    %c0_20 = arith.constant 0 : index
    %36 = vector.load %arg6[%c0_19, %c0_20] : memref<32x128xbf16, #tpu.memory_space<vmem>>, vector<32x128xbf16>
    %cst_21 = arith.constant dense<0.000000e+00> : vector<2x128xf32>
    %37 = tpu.matmul %35, %36, %cst_21 {dimension_numbers = #tpu.dot_dimension_numbers<[1], [0], [0], [1], [0, 0, 1, 1], [], []>} : vector<2x32xbf16>, vector<32x128xbf16>, vector<2x128xf32> -> vector<2x128xf32>
    %c0_22 = arith.constant 0 : index
    %c0_23 = arith.constant 0 : index
    %38 = vector.load %arg7[%c0_22, %c0_23] : memref<1x128xf32, #tpu.memory_space<vmem>>, vector<1x128xf32>
    %39 = vector.broadcast %38 : vector<1x128xf32> to vector<2x128xf32>
    %40 = arith.addf %37, %39 : vector<2x128xf32>
    %41 = arith.negf %40 : vector<2x128xf32>
    %42 = math.exp %41 : vector<2x128xf32>
    %cst_24 = arith.constant 1.000000e+00 : f32
    %43 = vector.broadcast %cst_24 : f32 to vector<2x128xf32>
    %44 = arith.addf %43, %42 : vector<2x128xf32>
    %45 = arith.divf %43, %44 : vector<2x128xf32>
    %c0_25 = arith.constant 0 : index
    %c0_26 = arith.constant 0 : index
    %46 = vector.load %arg9[%c0_25, %c0_26] : memref<2x128xf32, #tpu.memory_space<vmem>>, vector<2x128xf32>
    tpu.vector_store %arg9[%c0_25, %c0_26], %45 {strides = array<i32>} : memref<2x128xf32, #tpu.memory_space<vmem>>, vector<2x128xf32>,
    return
  }
  func.func @transform_0(%arg0: i32) -> (i32, i32, i32) {
    %c0_i32 = arith.constant 0 : i32
    %c0_i32_0 = arith.constant 0 : i32
    %c0_i32_1 = arith.constant 0 : i32
    return %arg0, %c0_i32, %c0_i32_0 : i32, i32, i32
  }
  func.func @transform_1(%arg0: i32) -> (i32, i32) {
    %c0_i32 = arith.constant 0 : i32
    %c0_i32_0 = arith.constant 0 : i32
    return %arg0, %c0_i32 : i32, i32
  }
  func.func @transform_2(%arg0: i32) -> (i32, i32) {
    %c0_i32 = arith.constant 0 : i32
    %c0_i32_0 = arith.constant 0 : i32
    %c0_i32_1 = arith.constant 0 : i32
    return %c0_i32, %c0_i32_0 : i32, i32
  }
  func.func @transform_3(%arg0: i32) -> (i32, i32) {
    %c0_i32 = arith.constant 0 : i32
    %c0_i32_0 = arith.constant 0 : i32
    %c0_i32_1 = arith.constant 0 : i32
    return %c0_i32, %c0_i32_0 : i32, i32
  }
  func.func @transform_4(%arg0: i32) -> (i32, i32) {
    %c0_i32 = arith.constant 0 : i32
    %c0_i32_0 = arith.constant 0 : i32
    %c0_i32_1 = arith.constant 0 : i32
    return %c0_i32, %c0_i32_0 : i32, i32
  }
  func.func @transform_5(%arg0: i32) -> (i32, i32) {
    %c0_i32 = arith.constant 0 : i32
    %c0_i32_0 = arith.constant 0 : i32
    %c0_i32_1 = arith.constant 0 : i32
    return %c0_i32, %c0_i32_0 : i32, i32
  }
  func.func @transform_6(%arg0: i32) -> (i32, i32) {
    %c0_i32 = arith.constant 0 : i32
    %c0_i32_0 = arith.constant 0 : i32
    %c0_i32_1 = arith.constant 0 : i32
    return %c0_i32, %c0_i32_0 : i32, i32
  }
  func.func @transform_7(%arg0: i32) -> (i32, i32) {
    %c0_i32 = arith.constant 0 : i32
    %c0_i32_0 = arith.constant 0 : i32
    return %arg0, %c0_i32 : i32, i32
  }
  func.func @transform_8(%arg0: i32) -> (i32, i32) {
    %c0_i32 = arith.constant 0 : i32
    %c0_i32_0 = arith.constant 0 : i32
    return %arg0, %c0_i32 : i32, i32
  }
}

</mosaic_0001>

<bundles_post_ra>
// kernel: tpu_custom_call.1
= control target key start
LH: loop header
LB: loop body
LE: loop exit
PB: predicated region body
PF: predicated region fallthrough
CT: control target
= control target key end

     0   :  { %14 = vsyncpa [#allocation3], 0  ;;  %v513_v1 = vmov 0.0   ;;  %vm514_vm0 = vmmov 0   ;;  %s645_s0 = inlined_call_operand.vmem [shape: f32[2,8,32], index: 0, kind: input, shape index: {}]   ;;  %s646_s1 = inlined_call_operand.vmem [shape: f32[2,8], index: 1, kind: input, shape index: {}]   ;;  %s647_s2 = inlined_call_operand.vmem [shape: bf16[32,16], index: 2, kind: input, shape index: {}]   ;;  %s648_s3 = inlined_call_operand.vmem [shape: f32[1,16], index: 3, kind: input, shape index: {}]   ;;  %s649_s4 = inlined_call_operand.vmem [shape: f32[1,16], index: 4, kind: input, shape index: {}]   ;;  %s650_s5 = inlined_call_operand.vmem [shape: bf16[32,128], index: 5, kind: input, shape index: {}]   ;;  %s651_s6 = inlined_call_operand.vmem [shape: f32[1,128], index: 6, kind: input, shape index: {}]   ;;  %s652_s7 = inlined_call_operand.hbm [shape: f32[2,8], index: 7, kind: output, shape index: {0}]   ;;  %s653_s8 = inlined_call_operand.hbm [shape: f32[2,128], index: 8, kind: output, shape index: {1}]  }
   0x1   :  { %v449_v0 = vld [vmem:[%s647_s2] sm:$0xff]   ;;  %416 = vmatprep.subr.bf16.mxu0 %v513_v1  ;;  %424 = vmatprep.subr.bf16.mxu1 %v513_v1  ;;  %v450_v2 = vld [vmem:[%s647_s2 + $0x8] sm:$0xff]  }
   0x2   :  { %417 = vmatpush3.bf16.msra.mxu0 %v449_v0  ;;  %420 = vmatprep.mubr.msk.bf16.mxu0 %vm514_vm0, %v513_v1  ;;  %v31_v3 = vld [vmem:[%s645_s0] sm:$0xff]  ;;  %v579_v4 = vld [vmem:[%s645_s0 + $0x8] sm:$0xff] }
   0x3   :  { %418 = vmatprep.subr.bf16.mxu0 %v513_v1  ;;  %426 = vmatprep.mubr.msk.bf16.mxu1 %vm514_vm0, %v513_v1 }
   0x4   :  { %15 = vsyncpa [#allocation5], 0  ;;  %v405_v5 = vpack.c.bf16 %v579_v4, %v31_v3  ;;  %vm63_vm1 = vcmask 261120   ;;  %v391_v6 = vld [vmem:[%s648_s3] ss:$0 sm:$0xff]  ;;  %vm119_vm2 = vcmask 130048   ;;  %v130_v20 = vlaneseq }
   0x5   :  { %v396_v13 = vld [vmem:[%s649_s4] ss:$0 sm:$0xff]  ;;  %vm140_vm3 = vcmask 1041409   ;;  %vm144_vm5 = vcmask 58368   ;;  %v33_v37 = vpack.c.bf16 %v31_v3, %v31_v3  ;;  %vm184_vm6 = vcmask 1043456   ;;  %v452_v58 = vld [vmem:[%s650_s5 + $0x8] sm:$0xff]  }
   0x6   :  { %419 = vmatpush3.bf16.msra.mxu0 %v450_v2  ;;  %v131_v21 = vand.u32 127, %v130_v20  ;;  %v133_v22 = vshrl.u32 %v130_v20, 7  ;;  %v126_v25 = vld [vmem:[%s646_s1] sm:$0x3]  ;;  %v515_v40 = vmov 1966171168   ;;  %v34_v48 = vpack.c.bf16 %v579_v4, %v579_v4 }
   0x7   :  { %436 = vmatprep.subr.bf16.mxu0 %v513_v1  ;;  %vm127_vm4 = vcmp.gt.f32.partialorder %v126_v25, 0.5  ;;  %v186_v38 = vsel %vm184_vm6, %v33_v37, 0  ;;  %v160_v41 = vunpack.c.l.s4 %v515_v40  ;;  %vm180_vm7 = vcmask 64512   ;;  %v451_v57 = vld [vmem:[%s650_s5] sm:$0xff]   ;;  %s516_s5 = smov [#allocation2]  }
   0x8   :  { %v134_v24 = vsub.s32 %v131_v21, %v133_v22  ;;  %425 = vmatpush3.bf16.msra.mxu1 %v186_v38  ;;  %v178_v50 = vsub.s32 0, %v133_v22  ;;  %v237_v52 = vsel %vm184_vm6, %v34_v48, 0  ;;  %s369_s18 = sshll.u32 %s516_s5, 4  ;;  %s370_s18 = int_to_ptr.vmem [resolvable:$true] %s369_s18 }
   0x9   :  { %421 = vmatmul.mubr.msk.bf16.vlgmr.msra.gmra.mrb[0].mxu0 %vm63_vm1, %v405_v5  ;;  %430 = vmatprep.subr.bf16.mxu1 %v513_v1  ;;  %v161_v42 = vunpack.c.0.s8 %v160_v41  ;;  %s465_s19 = scalar_lea.vmem %s370_s18, 32  ;;  %p470_p1 = scmp.lt.s32.totalorder %s370_s18, %s370_s18 }
   0xa   :  { %440 = vmatprep.mubr.msk.bf16.mxu0 %vm514_vm0, %v513_v1  ;;  %437 = vmatpush3.bf16.msra.mxu0 %v451_v57  ;;  %p466_p0 = scmp.ne.s32.totalorder %s370_s18, %s465_s19  ;;  %p471_p2 = scmp.lt.s32.totalorder %s465_s19, %s465_s19 }
   0xb   :  { %v164_v44 = vsub.s32 %v161_v42, %v133_v22  ;;  %438 = vmatprep.subr.bf16.mxu0 %v513_v1 }
   0xc   :  { %p472_p3 = por %p471_p2, %p470_p1 }
   0xe   :  { %439 = vmatpush3.bf16.msra.mxu0 %v452_v58  ;;  %p473_p4 = pnand %p472_p3, %p466_p0 }
  0xdc   :  { %v101_v7 = vpop.f32.mrb[0].mxu0 }
  0xdd   :  { %v102_v8 = vadd.f32 %v391_v6, %v101_v7  ;;  %v422_v9 = vpop.f32.mrb[1].mxu0 }
  0xde   :  { %v104_v10 = vpop.f32.mrb[2].mxu0 }
  0xdf   :  { %453 = vtanh.f32 %v102_v8  ;;  %v105_v11 = vadd.f32 %v391_v6, %v104_v10  ;;  %v423_v12 = vpop.f32.mrb[3].mxu0 }
  0xe1   :  { %455 = vtanh.f32 %v105_v11 }
  0xe9   :  { %v454_v14 = vpop.eup %453 }
  0xea   :  { %v117_v15 = vmul.f32 %v454_v14, %v396_v13 }
  0xeb   :  { %v456_v16 = vpop.eup %455 }
  0xec   :  { %v120_v17 = vsel %vm119_vm2, %v117_v15, 0.0  ;;  %v118_v18 = vmul.f32 %v456_v16, %v396_v13 }
  0xed   :  { %121 = vadd.xlane.f32.xlu0 %v120_v17 }
  0xee   :  { %v123_v19 = vsel %vm119_vm2, %v118_v18, 0.0 }
  0xf1   :  { %124 = vadd.xlane.f32.xlu0 %v123_v19 }
 0x17a   :  { %v122_v23 = vpop.xlane.xlu0 %121 }
 0x17b   :  { %v135_v27 = vrot.slane %v122_v23, %v134_v24 }
 0x17e   :  { %v125_v26 = vpop.xlane.xlu0 %124 }
 0x17f   :  { %v139_v28 = vrot.slane %v125_v26, %v134_v24 }
 0x181   :  { %v141_v29 = vsel %vm140_vm3, %v139_v28, %v135_v27 }
 0x182   :  { %v143_v30 = vsel %vm127_vm4, -1e+30, %v141_v29 }
 0x183   :  { %v145_v31 = vsel %vm144_vm5, %v143_v30, -inf }
 0x184   :  { %146 = vmax.xlane.f32.xlu1 %v145_v31 }
 0x211   :  { %v147_v32 = vpop.xlane.xlu1 %146 }
 0x212   :  { %v148_v33 = vsub.f32 %v143_v30, %v147_v32 }
 0x214   :  { %v149_v34 = vmul.f32 1.442695, %v148_v33 }
 0x216   :  { %457 = vpow2.f32 %v149_v34 }
 0x220   :  { %v458_v35 = vpop.eup %457 }
 0x221   :  { %v151_v36 = vsel %vm144_vm5, %v458_v35, 0.0 }
 0x222   :  { %152 = vadd.xlane.f32.xlu1 %v151_v36 }
 0x2af   :  { %v153_v39 = vpop.xlane.xlu1 %152 }
 0x2b0   :  { %459 = vrcp.f32 %v153_v39 }
 0x2ba   :  { %v460_v43 = vpop.eup %459 }
 0x2bb   :  { %v155_v45 = vmul.f32 %v460_v43, %v458_v35 }
 0x2bd   :  { %v157_v46 = vpack.c.bf16 %v155_v45, %v155_v45  ;;  %156 = vst.msk [vmem:[#allocation2] sm:$0x3] %vm144_vm5, %v155_v45 }
 0x2bf   :  { %v165_v47 = vrot.slane %v157_v46, %v164_v44 }
 0x2c1   :  { %v172_v49 = vrot.slane %v165_v47, %v164_v44 }
 0x2c3   :  { %v397_v51 = vpack.i.b16 %v172_v49, %v172_v49  ;;  %v174_v53 = vunpack.i.h.s16 %v172_v49 }
 0x2c5   :  { %v179_v54 = vrot.slane %v397_v51, %v178_v50  ;;  %v228_v55 = vpack.i.b16 %v174_v53, %v174_v53 }
 0x2c7   :  { %427 = vmatmul.mubr.msk.bf16.vlgmr.msra.gmra.mrb[0].mxu1 %vm180_vm7, %v179_v54  ;;  %v232_v56 = vrot.slane %v228_v55, %v178_v50 }
 0x2c8   :  { %431 = vmatpush3.bf16.msra.mxu1 %v237_v52  ;;  %432 = vmatprep.mubr.msk.bf16.mxu1 %vm514_vm0, %v513_v1 }
 0x2cf   :  { %433 = vmatmul.mubr.msk.bf16.vlgmr.msra.gmra.mrb[4].mxu1 %vm180_vm7, %v232_v56 }
 0x39a   :  { %v222_v59 = vpop.f32.mrb[0].mxu1 }
 0x39b   :  { %v428_v60 = vpop.f32.mrb[1].mxu1  ;;  %v279_v63 = vmax.f32 %v222_v59, 0.0 }
 0x39c   :  { %v225_v61 = vpop.f32.mrb[2].mxu1 }
 0x39d   :  { %v429_v62 = vpop.f32.mrb[3].mxu1  ;;  %v281_v5 = vpack.c.bf16 %v279_v63, %v279_v63 }
 0x39f   :  { %v296_v9 = vunpack.c.l.b16 %v281_v5 }
 0x3a2   :  { %v273_v0 = vpop.f32.mrb[4].mxu1 }
 0x3a3   :  { %v280_v2 = vmax.f32 %v273_v0, 0.0  ;;  %v434_v3 = vpop.f32.mrb[5].mxu1 }
 0x3a4   :  { %v276_v4 = vpop.f32.mrb[6].mxu1 }
 0x3a5   :  { %v282_v6 = vpack.c.bf16 %v280_v2, %v280_v2  ;;  %v435_v7 = vpop.f32.mrb[7].mxu1 }
 0x3a7   :  { %v297_v8 = vunpack.c.l.b16 %v282_v6 }
 0x3a9   :  { %v298_v1 = vrot.slane %v297_v8, 7 }
 0x3ab   :  { %v299_v10 = vsel %vm140_vm3, %v298_v1, %v296_v9 }
 0x3ac   :  { %v300_v11 = vpack.c.b16 %v299_v10, %v299_v10 }
 0x3ae   :  { %441 = vmatmul.mubr.msk.bf16.vlgmr.msra.gmra.mrb[4].mxu0 %vm63_vm1, %v300_v11 }
 0x3af   :  { %476 = shalt.err (!%p473_p4)
}
 0x3b0   :  { %s477_s22 = scalar_lea.hbm %s652_s7, 32 }
 0x3b1   :  { %p478_p5 = scmp.ne.s32.totalorder %s652_s7, %s477_s22  ;;  %p481_p6 = scmp.lt.u32.totalorder %s477_s22, %s652_s7 }
 0x3b3   :  { %p483_p7 = pnand %p481_p6, %p478_p5 }
 0x3b5   :  { %486 = shalt.err (!%p483_p7)
}
 0x3b6   :  { %372 = dma.vmem_to_hbm [thread:$0]  %s370_s18, 32, %s652_s7, [#allocation3]   ;;  %v400_v12 = vld [vmem:[%s651_s6] ss:$0 sm:$0xff] }
 0x3b7   :  { %s517_s9 = smov [#allocation4]  }
 0x3b8   :  { %s379_s10 = sshll.u32 %s517_s9, 4  ;;  %s380_s10 = int_to_ptr.vmem [resolvable:$true] %s379_s10 }
 0x3b9   :  { %s487_s7 = scalar_lea.vmem %s380_s10, 32  ;;  %p492_p9 = scmp.lt.s32.totalorder %s380_s10, %s380_s10 }
 0x3ba   :  { %p488_p8 = scmp.ne.s32.totalorder %s380_s10, %s487_s7  ;;  %p493_p10 = scmp.lt.s32.totalorder %s487_s7, %s487_s7 }
 0x3bc   :  { %p494_p11 = por %p493_p10, %p492_p9 }
 0x3be   :  { %p495_p12 = pnand %p494_p11, %p488_p8 }
 0x481   :  { %v350_v13 = vpop.f32.mrb[4].mxu0 }
 0x482   :  { %v351_v14 = vadd.f32 %v400_v12, %v350_v13  ;;  %v442_v15 = vpop.f32.mrb[5].mxu0 }
 0x483   :  { %v353_v16 = vpop.f32.mrb[6].mxu0 }
 0x484   :  { %v404_v17 = vmul.f32 -1.442695, %v351_v14  ;;  %v443_v18 = vpop.f32.mrb[7].mxu0 }
 0x486   :  { %461 = vpow2.f32 %v404_v17 }
 0x490   :  { %v462_v19 = vpop.eup %461 }
 0x491   :  { %v359_v20 = vadd.f32 1.0, %v462_v19 }
 0x493   :  { %463 = vrcp.f32 %v359_v20 }
 0x49d   :  { %v464_v21 = vpop.eup %463 }
 0x49e   :  { %362 = vst [vmem:[#allocation4] sm:$0x3] %v464_v21 }
 0x49f   :  { %498 = shalt.err (!%p495_p12)
}
 0x4a0   :  { %s499_s12 = scalar_lea.hbm %s653_s8, 32 }
 0x4a1   :  { %p500_p13 = scmp.ne.s32.totalorder %s653_s8, %s499_s12  ;;  %p503_p0 = scmp.lt.u32.totalorder %s499_s12, %s653_s8 }
 0x4a3   :  { %p505_p1 = pnand %p503_p0, %p500_p13 }
 0x4a5   :  { %508 = shalt.err (!%p505_p1)
}
 0x4a6   :  { %382 = dma.vmem_to_hbm [thread:$0]  %s380_s10, 32, %s653_s8, [#allocation5]  }
 0x4a7   :  { %509 = dma.done.wait [#allocation3], 32  }
 0x4a8   :  { %510 = vsyncadd [#allocation3], 4294967264 }
 0x4a9   :  { %511 = dma.done.wait [#allocation5], 32  }
 0x4aa   :  { %512 = vsyncadd [#allocation5], 4294967264 }
 0x4ab   :  { %389 = vsyncpa [#allocation3], 1 }
 0x4ac   :  { %390 = vsyncpa [#allocation5], 1 }

</bundles_post_ra>
